<compile_context>
chip_gen: v7x
topology: tpu7x:2x2x1
jax: 0.10.0
libtpu: 0.0.40
codegen_flags: <defaults>
</compile_context>

<pallas_src>
import functools

import jax
import jax.numpy as jnp
from jax.experimental import pallas as pl
from jax.experimental.pallas import tpu as pltpu


def _round_up(x, m):
    return ((x + m - 1) // m) * m


# -----------------------------------------------------------------------------
# Kernel: one batch tile of   out = xd @ Wd + xp @ Wp + xm @ Wm + b
# -----------------------------------------------------------------------------
def simplenet_v_kernel(xd_ref, xp_ref, xm_ref, wd_ref, wp_ref, wm_ref, b_ref,
                       o_ref):
    """xd/xp/xm: (TB, K_mod) bf16; w*: (K_mod, NO) f32; b: (1, NO); o: (TB, NO)."""
    acc = jnp.dot(xd_ref[...], wd_ref[...], preferred_element_type=jnp.float32)
    acc = acc + jnp.dot(xp_ref[...], wp_ref[...], preferred_element_type=jnp.float32)
    acc = acc + jnp.dot(xm_ref[...], wm_ref[...], preferred_element_type=jnp.float32)
    o_ref[...] = (acc + b_ref[...]).astype(o_ref.dtype)


# -----------------------------------------------------------------------------
# One-time algebraic collapse of the affine network (cache per parameter set).
# -----------------------------------------------------------------------------
def fold_simplenet_v_params(params, visit_num):
    hi = jax.lax.Precision.HIGHEST
    wd, bd = params["wd"], params["bd"]
    wp, bp = params["wp"], params["bp"]
    wm, bm = params["wm"], params["bm"]
    wo, bo = params["wo"], params["bo"]          # wo: (V, E, voc2), bo: (1, voc2)

    voc2 = wo.shape[-1]
    NO = max(128, _round_up(voc2, 128))          # lane-dense output width

    def fold_mod(w):                             # (voc_i, E) -> (V, voc_i, NO)
        f = jnp.einsum("fe,veo->vfo", w, wo, precision=hi)
        return jnp.pad(f, ((0, 0), (0, 0), (0, NO - voc2)))

    wdf, wpf, wmf = fold_mod(wd), fold_mod(wp), fold_mod(wm)

    # Every one of the visit_num visit slots (real or zero-padded) contributes
    # the encoder bias, so the bias fold sums Wo over ALL visits.
    b_fold = jnp.einsum("xe,eo->xo", bd + bp + bm, wo.sum(axis=0),
                        precision=hi) + bo
    b_fold = jnp.pad(b_fold, ((0, 0), (0, NO - voc2)))
    return dict(wdf=wdf, wpf=wpf, wmf=wmf, b=b_fold)


# -----------------------------------------------------------------------------
# Forward (jit this; visit_num / voc2 are closed over as Python ints).
# -----------------------------------------------------------------------------
def simplenet_v_forward(diags, procs, meds, folded, *, visit_num, voc2):
    B, seq_len, _ = diags.shape
    v_eff = min(seq_len, visit_num)
    NO = folded["b"].shape[-1]

    if v_eff == 0:
        # Degenerate case: every visit is zero padding -> output is the bias fold.
        return jnp.broadcast_to(folded["b"][:, :voc2], (B, voc2))

    # Free views: truncate to the real visits, flatten, cast to bf16 (exact
    # for 0/1 multi-hot).  No HBM concat, no materialized zero-visit padding.
    def flat_x(x):
        return x[:, :v_eff, :].reshape(B, -1).astype(jnp.bfloat16)

    xd, xp, xm = flat_x(diags), flat_x(procs), flat_x(meds)

    def flat_w(w):                               # keep only the real visits' rows
        return w[:v_eff].reshape(-1, NO)

    wdf, wpf, wmf = flat_w(folded["wdf"]), flat_w(folded["wpf"]), flat_w(folded["wmf"])
    b_fold = folded["b"]

    # ---- batch tiling: tile multiple of 16 (bf16 sublane packing); waste is
    # bounded to <16 rows per grid step; >=2 grid steps when the batch allows
    # it so both v7x TensorCores are used on the "parallel" axis. ----
    TB_MAX = 2048
    B16 = _round_up(B, 16)
    n_steps = max(2 if B16 >= 32 else 1, pl.cdiv(B16, TB_MAX))
    TB = _round_up(pl.cdiv(B16, n_steps), 16)
    B_pad = n_steps * TB

    def pad_batch(x):
        return jnp.pad(x, ((0, B_pad - B), (0, 0))) if B_pad != B else x

    xd, xp, xm = pad_batch(xd), pad_batch(xp), pad_batch(xm)
    Kd, Kp, Km = xd.shape[1], xp.shape[1], xm.shape[1]

    out = pl.pallas_call(
        simplenet_v_kernel,
        out_shape=jax.ShapeDtypeStruct((B_pad, NO), jnp.float32),
        grid=(n_steps,),
        in_specs=[
            pl.BlockSpec((TB, Kd), lambda i: (i, 0)),   # activations: tiled over batch
            pl.BlockSpec((TB, Kp), lambda i: (i, 0)),
            pl.BlockSpec((TB, Km), lambda i: (i, 0)),
            pl.BlockSpec((Kd, NO), lambda i: (0, 0)),   # folded weights: resident
            pl.BlockSpec((Kp, NO), lambda i: (0, 0)),
            pl.BlockSpec((Km, NO), lambda i: (0, 0)),
            pl.BlockSpec((1, NO), lambda i: (0, 0)),    # folded bias: resident
        ],
        out_specs=pl.BlockSpec((TB, NO), lambda i: (i, 0)),
        compiler_params=pltpu.CompilerParams(
            dimension_semantics=("parallel",),
        ),
    )(xd, xp, xm, wdf, wpf, wmf, b_fold)

    # Sliced under the same jit -> fuses with the consumer (no extra HBM pass).
    return out[:B, :voc2]


# -----------------------------------------------------------------------------
# Parameter init (PyTorch-Linear-style uniform bounds) and pure-JAX reference.
# -----------------------------------------------------------------------------
def make_params(key, emb_dim, visit_num, voc_size):
    ks = jax.random.split(key, 8)
    voc0, voc1, voc2 = voc_size

    def lin(kw, kb, fan_in, fan_out):
        bound = 1.0 / jnp.sqrt(jnp.float32(fan_in))
        w = jax.random.uniform(kw, (fan_in, fan_out), jnp.float32, -bound, bound)
        b = jax.random.uniform(kb, (1, fan_out), jnp.float32, -bound, bound)
        return w, b

    wd, bd = lin(ks[0], ks[1], voc0, emb_dim)
    wp, bp = lin(ks[2], ks[3], voc1, emb_dim)
    wm, bm = lin(ks[4], ks[5], voc2, emb_dim)
    wo_flat, bo = lin(ks[6], ks[7], emb_dim * visit_num, voc2)
    wo = wo_flat.reshape(visit_num, emb_dim, voc2)
    return dict(wd=wd, bd=bd, wp=wp, bp=bp, wm=wm, bm=bm, wo=wo, bo=bo)


def reference_forward(diags, procs, meds, params, visit_num):
    """Pure-JAX reference mirroring the PyTorch forward exactly."""
    def fix_visits(x):
        b, s, f = x.shape
        if s < visit_num:
            pad = jnp.zeros((b, visit_num - s, f), dtype=x.dtype)
            return jnp.concatenate([x, pad], axis=1)
        return x[:, :visit_num, :]

    diags, procs, meds = fix_visits(diags), fix_visits(procs), fix_visits(meds)
    de = jnp.einsum("bvi,ie->bve", diags, params["wd"]) + params["bd"][0]
    pe = jnp.einsum("bvi,ie->bve", procs, params["wp"]) + params["bp"][0]
    me = jnp.einsum("bvi,ie->bve", meds, params["wm"]) + params["bm"][0]
    visits = de + pe + me
    patient = visits.reshape(visits.shape[0], -1)
    wo_flat = params["wo"].reshape(-1, params["wo"].shape[-1])
    return patient @ wo_flat + params["bo"][0]


if __name__ == "__main__":
    emb_dim = 32
    visit_num = 4
    voc_size = (16, 12, 24)
    B = 2

    key = jax.random.PRNGKey(0)
    kp, kd, kpr, km, kd2, kpr2, km2 = jax.random.split(key, 7)

    params = make_params(kp, emb_dim, visit_num, voc_size)
    folded = fold_simplenet_v_params(params, visit_num)       # once per param set

    fwd = jax.jit(functools.partial(simplenet_v_forward,
                                    visit_num=visit_num, voc2=voc_size[2]))

    # Case 1: seq_len < visit_num (padded visits absorbed into b_fold).
    seq_len = 3
    diags = jax.random.bernoulli(kd, 0.3, (B, seq_len, voc_size[0])).astype(jnp.float32)
    procs = jax.random.bernoulli(kpr, 0.3, (B, seq_len, voc_size[1])).astype(jnp.float32)
    meds = jax.random.bernoulli(km, 0.3, (B, seq_len, voc_size[2])).astype(jnp.float32)
    out = jax.block_until_ready(fwd(diags, procs, meds, folded))
    ref = reference_forward(diags, procs, meds, params, visit_num)
    assert out.shape == (B, voc_size[2])
    assert jnp.allclose(out, ref, atol=1e-4, rtol=1e-4), float(jnp.max(jnp.abs(out - ref)))

    # Case 2: seq_len > visit_num (truncation path).
    seq_len = 6
    diags = jax.random.bernoulli(kd2, 0.3, (B, seq_len, voc_size[0])).astype(jnp.float32)
    procs = jax.random.bernoulli(kpr2, 0.3, (B, seq_len, voc_size[1])).astype(jnp.float32)
    meds = jax.random.bernoulli(km2, 0.3, (B, seq_len, voc_size[2])).astype(jnp.float32)
    out = jax.block_until_ready(fwd(diags, procs, meds, folded))
    ref = reference_forward(diags, procs, meds, params, visit_num)
    assert out.shape == (B, voc_size[2])
    assert jnp.allclose(out, ref, atol=1e-4, rtol=1e-4), float(jnp.max(jnp.abs(out - ref)))

    print("KERNEL_OK")
</pallas_src>

<mosaic_0001>
module attributes {stable_mosaic.version = 11 : i64} {
  func.func @simplenet_v_kernel(%arg0: i32, %arg1: memref<16x48xbf16, #tpu.memory_space<vmem>>, %arg2: memref<16x36xbf16, #tpu.memory_space<vmem>>, %arg3: memref<16x72xbf16, #tpu.memory_space<vmem>>, %arg4: memref<48x128xf32, #tpu.memory_space<vmem>>, %arg5: memref<36x128xf32, #tpu.memory_space<vmem>>, %arg6: memref<72x128xf32, #tpu.memory_space<vmem>>, %arg7: memref<1x128xf32, #tpu.memory_space<vmem>>, %arg8: memref<16x128xf32, #tpu.memory_space<vmem>>) attributes {dimension_semantics = [#tpu.dimension_semantics<parallel>], iteration_bounds = array<i64: 1>, scalar_prefetch = 0 : i64, scratch_operands = 0 : i64, tpu.core_type = #tpu.core_type<tc>, window_params = [{transform_indices = @transform_0, window_bounds = array<i64: 16, 48>}, {transform_indices = @transform_1, window_bounds = array<i64: 16, 36>}, {transform_indices = @transform_2, window_bounds = array<i64: 16, 72>}, {pipeline_mode = #tpu.pipeline_mode<synchronous>, transform_indices = @transform_3, window_bounds = array<i64: 48, 128>}, {pipeline_mode = #tpu.pipeline_mode<synchronous>, transform_indices = @transform_4, window_bounds = array<i64: 36, 128>}, {pipeline_mode = #tpu.pipeline_mode<synchronous>, transform_indices = @transform_5, window_bounds = array<i64: 72, 128>}, {pipeline_mode = #tpu.pipeline_mode<synchronous>, transform_indices = @transform_6, window_bounds = array<i64: 1, 128>}, {transform_indices = @transform_7, window_bounds = array<i64: 16, 128>}]} {
    %c0 = arith.constant 0 : index
    %c0_0 = arith.constant 0 : index
    %0 = vector.load %arg1[%c0, %c0_0] : memref<16x48xbf16, #tpu.memory_space<vmem>>, vector<16x48xbf16>
    %c0_1 = arith.constant 0 : index
    %c0_2 = arith.constant 0 : index
    %1 = vector.load %arg4[%c0_1, %c0_2] : memref<48x128xf32, #tpu.memory_space<vmem>>, vector<48x128xf32>
    %cst = arith.constant dense<0.000000e+00> : vector<16x128xf32>
    %2 = tpu.matmul %0, %1, %cst {dimension_numbers = #tpu.dot_dimension_numbers<[1], [0], [0], [1], [0, 0, 1, 1], [], []>} : vector<16x48xbf16>, vector<48x128xf32>, vector<16x128xf32> -> vector<16x128xf32>
    %c0_3 = arith.constant 0 : index
    %c0_4 = arith.constant 0 : index
    %3 = vector.load %arg2[%c0_3, %c0_4] : memref<16x36xbf16, #tpu.memory_space<vmem>>, vector<16x36xbf16>
    %c0_5 = arith.constant 0 : index
    %c0_6 = arith.constant 0 : index
    %4 = vector.load %arg5[%c0_5, %c0_6] : memref<36x128xf32, #tpu.memory_space<vmem>>, vector<36x128xf32>
    %cst_7 = arith.constant dense<0.000000e+00> : vector<16x128xf32>
    %5 = tpu.matmul %3, %4, %cst_7 {dimension_numbers = #tpu.dot_dimension_numbers<[1], [0], [0], [1], [0, 0, 1, 1], [], []>} : vector<16x36xbf16>, vector<36x128xf32>, vector<16x128xf32> -> vector<16x128xf32>
    %6 = arith.addf %2, %5 : vector<16x128xf32>
    %c0_8 = arith.constant 0 : index
    %c0_9 = arith.constant 0 : index
    %7 = vector.load %arg3[%c0_8, %c0_9] : memref<16x72xbf16, #tpu.memory_space<vmem>>, vector<16x72xbf16>
    %c0_10 = arith.constant 0 : index
    %c0_11 = arith.constant 0 : index
    %8 = vector.load %arg6[%c0_10, %c0_11] : memref<72x128xf32, #tpu.memory_space<vmem>>, vector<72x128xf32>
    %cst_12 = arith.constant dense<0.000000e+00> : vector<16x128xf32>
    %9 = tpu.matmul %7, %8, %cst_12 {dimension_numbers = #tpu.dot_dimension_numbers<[1], [0], [0], [1], [0, 0, 1, 1], [], []>} : vector<16x72xbf16>, vector<72x128xf32>, vector<16x128xf32> -> vector<16x128xf32>
    %10 = arith.addf %6, %9 : vector<16x128xf32>
    %c0_13 = arith.constant 0 : index
    %c0_14 = arith.constant 0 : index
    %11 = vector.load %arg7[%c0_13, %c0_14] : memref<1x128xf32, #tpu.memory_space<vmem>>, vector<1x128xf32>
    %12 = vector.broadcast %11 : vector<1x128xf32> to vector<16x128xf32>
    %13 = arith.addf %10, %12 : vector<16x128xf32>
    %c0_15 = arith.constant 0 : index
    %c0_16 = arith.constant 0 : index
    %14 = vector.load %arg8[%c0_15, %c0_16] : memref<16x128xf32, #tpu.memory_space<vmem>>, vector<16x128xf32>
    tpu.vector_store %arg8[%c0_15, %c0_16], %13 {strides = array<i32>} : memref<16x128xf32, #tpu.memory_space<vmem>>, vector<16x128xf32>,
    return
  }
  func.func @transform_0(%arg0: i32) -> (i32, i32) {
    %c0_i32 = arith.constant 0 : i32
    %c0_i32_0 = arith.constant 0 : i32
    return %arg0, %c0_i32 : i32, i32
  }
  func.func @transform_1(%arg0: i32) -> (i32, i32) {
    %c0_i32 = arith.constant 0 : i32
    %c0_i32_0 = arith.constant 0 : i32
    return %arg0, %c0_i32 : i32, i32
  }
  func.func @transform_2(%arg0: i32) -> (i32, i32) {
    %c0_i32 = arith.constant 0 : i32
    %c0_i32_0 = arith.constant 0 : i32
    return %arg0, %c0_i32 : i32, i32
  }
  func.func @transform_3(%arg0: i32) -> (i32, i32) {
    %c0_i32 = arith.constant 0 : i32
    %c0_i32_0 = arith.constant 0 : i32
    %c0_i32_1 = arith.constant 0 : i32
    return %c0_i32, %c0_i32_0 : i32, i32
  }
  func.func @transform_4(%arg0: i32) -> (i32, i32) {
    %c0_i32 = arith.constant 0 : i32
    %c0_i32_0 = arith.constant 0 : i32
    %c0_i32_1 = arith.constant 0 : i32
    return %c0_i32, %c0_i32_0 : i32, i32
  }
  func.func @transform_5(%arg0: i32) -> (i32, i32) {
    %c0_i32 = arith.constant 0 : i32
    %c0_i32_0 = arith.constant 0 : i32
    %c0_i32_1 = arith.constant 0 : i32
    return %c0_i32, %c0_i32_0 : i32, i32
  }
  func.func @transform_6(%arg0: i32) -> (i32, i32) {
    %c0_i32 = arith.constant 0 : i32
    %c0_i32_0 = arith.constant 0 : i32
    %c0_i32_1 = arith.constant 0 : i32
    return %c0_i32, %c0_i32_0 : i32, i32
  }
  func.func @transform_7(%arg0: i32) -> (i32, i32) {
    %c0_i32 = arith.constant 0 : i32
    %c0_i32_0 = arith.constant 0 : i32
    return %arg0, %c0_i32 : i32, i32
  }
}

</mosaic_0001>

<bundles_post_ra>
// kernel: simplenet_v_forward.1
= control target key start
LH: loop header
LB: loop body
LE: loop exit
PB: predicated region body
PF: predicated region fallthrough
CT: control target
= control target key end

     0   :  { %v436_v0 = vmov 0.0|0.0   ;;  %vm437_vm0 = vmmov 0   ;;  %v438_v8 = vmov 0.0   ;;  %vm51_vm1 = vcmask 1043456   ;;  %s560_s4 = inlined_call_operand.vmem [shape: f32[36,128], index: 4, kind: input, shape index: {}]   ;;  %s561_s5 = inlined_call_operand.vmem [shape: f32[72,128], index: 5, kind: input, shape index: {}]   ;;  %s562_s1 = inlined_call_operand.vmem [shape: bf16[16,36], index: 1, kind: input, shape index: {}]   ;;  %s563_s3 = inlined_call_operand.vmem [shape: f32[48,128], index: 3, kind: input, shape index: {}]   ;;  %s564_s2 = inlined_call_operand.vmem [shape: bf16[16,72], index: 2, kind: input, shape index: {}]   ;;  %s565_s0 = inlined_call_operand.vmem [shape: bf16[16,48], index: 0, kind: input, shape index: {}]   ;;  %s566_s6 = inlined_call_operand.vmem [shape: f32[1,128], index: 6, kind: input, shape index: {}]   ;;  %s567_s7 = inlined_call_operand.vmem [shape: f32[16,128], index: 7, kind: output, shape index: {}]  }
   0x1   :  { %403 = vmatprep.subr.bf16.mxu1 %v436_v0  ;;  %v37_v1 = vld [vmem:[%s560_s4] sm:$0xff]  ;;  %v38_v2 = vld [vmem:[%s560_s4 + $0x8] sm:$0xff]  ;;  %418 = vmatprep.subr.bf16.mxu0 %v436_v0  ;;  %v39_v6 = vld [vmem:[%s560_s4 + $0x10] sm:$0xff]  ;;  %vm47_vm2 = vcmask 293888   ;;  %vm226_vm3 = vcmask 588800   ;;  %vm133_vm4 = vcmask 392192  }
   0x2   :  { %v212_v3 = vld [vmem:[%s561_s5] sm:$0xff]  ;;  %v404_v4 = vpack.c.bf16 %v38_v2, %v37_v1  ;;  %v213_v5 = vld [vmem:[%s561_s5 + $0x8] sm:$0xff]  ;;  %v40_v7 = vld [vmem:[%s560_s4 + $0x18] sm:$0xff]  ;;  %361 = vmatprep.mubr.msk.bf16.mxu1 %vm437_vm0, %v438_v8  ;;  %399 = vmatprep.mubr.msk.bf16.mxu0 %vm437_vm0, %v438_v8 }
   0x3   :  { %v419_v9 = vpack.c.bf16 %v213_v5, %v212_v3  ;;  %v214_v10 = vld [vmem:[%s561_s5 + $0x10] sm:$0xff]  ;;  %v215_v11 = vld [vmem:[%s561_s5 + $0x18] sm:$0xff]  ;;  %v407_v12 = vpack.c.bf16 %v40_v7, %v39_v6  ;;  %v29_v14 = vld [vmem:[%s563_s3] sm:$0xff] }
   0x4   :  { %405 = vmatpush3.bf16.msra.mxu1 %v404_v4  ;;  %v422_v13 = vpack.c.bf16 %v215_v11, %v214_v10  ;;  %v30_v15 = vld [vmem:[%s563_s3 + $0x8] sm:$0xff]  ;;  %v216_v16 = vld [vmem:[%s561_s5 + $0x20] sm:$0xff]  ;;  %v31_v22 = vld [vmem:[%s563_s3 + $0x10] sm:$0xff] }
   0x5   :  { %406 = vmatprep.subr.bf16.mxu1 %v436_v0  ;;  %420 = vmatpush3.bf16.msra.mxu0 %v419_v9  ;;  %v217_v17 = vld [vmem:[%s561_s5 + $0x28] sm:$0xff]  ;;  %v41_v18 = vld [vmem:[%s560_s4 + $0x20] sm:$0xf]  ;;  %v410_v20 = vpack.c.bf16 %v30_v15, %v29_v14  ;;  %v32_v23 = vld [vmem:[%s563_s3 + $0x18] sm:$0xff] }
   0x6   :  { %421 = vmatprep.subr.bf16.mxu0 %v436_v0  ;;  %v433_v19 = vld [vmem:[%s562_s1] sm:$0xff]   ;;  %v425_v21 = vpack.c.bf16 %v217_v17, %v216_v16  ;;  %v218_v24 = vld [vmem:[%s561_s5 + $0x30] sm:$0xff]  ;;  %v219_v25 = vld [vmem:[%s561_s5 + $0x38] sm:$0xff]  ;;  %v413_v26 = vpack.c.bf16 %v32_v23, %v31_v22 }
   0x7   :  { %v428_v27 = vpack.c.bf16 %v219_v25, %v218_v24  ;;  %v33_v28 = vld [vmem:[%s563_s3 + $0x20] sm:$0xff]  ;;  %v34_v29 = vld [vmem:[%s563_s3 + $0x28] sm:$0xff] }
   0x8   :  { %408 = vmatpush3.bf16.msra.mxu1 %v407_v12  ;;  %v416_v30 = vpack.c.bf16 %v34_v29, %v33_v28  ;;  %v220_v31 = vld [vmem:[%s561_s5 + $0x40] sm:$0xff] }
   0x9   :  { %359 = vmatprep.subr.mxu1 %v438_v8  ;;  %423 = vmatpush3.bf16.msra.mxu0 %v422_v13  ;;  %v434_v32 = vld [vmem:[%s564_s2] sm:$0xff]  }
   0xa   :  { %424 = vmatprep.subr.bf16.mxu0 %v436_v0  ;;  %v435_v33 = vld [vmem:[%s565_s0] sm:$0xff]  }
   0xb   :  { %v327_v45 = vld [vmem:[%s566_s6] ss:$0 sm:$0xff] }
   0xc   :  { %360 = vmatpush3.msk.msra.mxu1 %vm51_vm1, %v41_v18 }
   0xd   :  { %362 = vmatmul.mubr.msk.bf16.vlgmr.msra.gmra.mrb[0].mxu1 %vm47_vm2, %v433_v19  ;;  %409 = vmatprep.subr.bf16.mxu1 %v436_v0 }
   0xe   :  { %411 = vmatpush3.bf16.msra.mxu1 %v410_v20  ;;  %426 = vmatpush3.bf16.msra.mxu0 %v425_v21 }
   0xf   :  { %412 = vmatprep.subr.bf16.mxu1 %v436_v0  ;;  %427 = vmatprep.subr.bf16.mxu0 %v436_v0 }
  0x10   :  { %377 = vmatprep.mubr.msk.bf16.mxu1 %vm437_vm0, %v438_v8 }
  0x12   :  { %414 = vmatpush3.bf16.msra.mxu1 %v413_v26  ;;  %429 = vmatpush3.bf16.msra.mxu0 %v428_v27 }
  0x13   :  { %415 = vmatprep.subr.bf16.mxu1 %v436_v0  ;;  %397 = vmatprep.subr.mxu0 %v438_v8 }
  0x16   :  { %417 = vmatpush3.bf16.msra.mxu1 %v416_v30  ;;  %398 = vmatpush3.msra.mxu0 %v220_v31 }
  0x17   :  { %400 = vmatmul.mubr.msk.bf16.vlgmr.msra.gmra.mrb[0].mxu0 %vm226_vm3, %v434_v32 }
  0x19   :  { %378 = vmatmul.mubr.msk.bf16.vlgmr.msra.gmra.mrb[4].mxu1 %vm133_vm4, %v435_v33 }
  0xe0   :  { %v121_v34 = vpop.f32.mrb[0].mxu1 }
  0xe1   :  { %v363_v35 = vpop.f32.mrb[1].mxu1 }
  0xe2   :  { %v124_v36 = vpop.f32.mrb[2].mxu1 }
  0xe3   :  { %v364_v37 = vpop.f32.mrb[3].mxu1 }
  0xea   :  { %v296_v38 = vpop.f32.mrb[0].mxu0 }
  0xeb   :  { %v401_v39 = vpop.f32.mrb[1].mxu0 }
  0xec   :  { %v203_v40 = vpop.f32.mrb[4].mxu1  ;;  %v299_v41 = vpop.f32.mrb[2].mxu0 }
  0xed   :  { %v204_v42 = vadd.f32 %v203_v40, %v121_v34  ;;  %v379_v43 = vpop.f32.mrb[5].mxu1  ;;  %v402_v44 = vpop.f32.mrb[3].mxu0 }
  0xee   :  { %v206_v46 = vpop.f32.mrb[6].mxu1 }
  0xef   :  { %v303_v47 = vadd.f32 %v296_v38, %v204_v42  ;;  %v207_v48 = vadd.f32 %v206_v46, %v124_v36  ;;  %v380_v49 = vpop.f32.mrb[7].mxu1 }
  0xf1   :  { %v312_v50 = vadd.f32 %v327_v45, %v303_v47  ;;  %v304_v51 = vadd.f32 %v299_v41, %v207_v48 }
  0xf3   :  { %314 = vst [vmem:[%s567_s7] sm:$0xff] %v312_v50  ;;  %v313_v52 = vadd.f32 %v327_v45, %v304_v51 }
  0xf5   :  { %315 = vst [vmem:[%s567_s7 + $0x8] sm:$0xff] %v313_v52 }

</bundles_post_ra>
